<compile_context>
chip_gen: v7x
topology: tpu7x:2x2x1
jax: 0.10.0
libtpu: 0.0.40
codegen_flags: <defaults>
</compile_context>

<pallas_src>
import functools

import jax
import jax.numpy as jnp
import numpy as np
from jax.experimental import pallas as pl
from jax.experimental.pallas import tpu as pltpu

LEAKY_SLOPE = 0.05
_LANE = 128


# --------------------------------------------------------------------------------------
# Kernel
# --------------------------------------------------------------------------------------
def _block_curve_kernel(xT_ref, w_ref, b_ref, o_ref, *, n_layers, f_in):
    """Fused BlockCurveEmbedder forward for one feature-major batch tile.

    xT_ref: (F, bt)                       input features, batch on lanes
    w_ref : (n_layers, D, D)              transposed (out, in) block-diag weights, zero-padded
    b_ref : (n_layers, D, 1)              column biases, zero-padded
    o_ref : (2, bt)                       lane-dense output tile
    """
    h = xT_ref[...].astype(jnp.float32)                      # (F, bt), f32 everywhere
    for li in range(n_layers):
        w = w_ref[li]                                        # (D, D)
        if li == 0:
            w = w[:, :f_in]                                  # only F input columns are real
        h = jnp.dot(w, h, preferred_element_type=jnp.float32) + b_ref[li]
        if li < n_layers - 1:
            h = jnp.maximum(h, LEAKY_SLOPE * h)              # LeakyReLU(0.05)
    o_ref[...] = h[:2, :].astype(o_ref.dtype)                # only the first 2 rows are real


# --------------------------------------------------------------------------------------
# Host-side parameter packing
# --------------------------------------------------------------------------------------
def _pack_params(params):
    """Fuse curve/block MLPs into block-diagonal layers, fold the Linear(4,2) output
    layer into the last (activation-free) linear, transpose to (out, in) and stack into
    two zero-padded arrays (one weight stack, one bias stack)."""
    curve_params, block_params, out_params = params
    assert len(curve_params) == len(block_params)
    w_o = np.asarray(out_params[0], np.float64)              # (4, 2)
    b_o = np.asarray(out_params[1], np.float64)              # (1, 2)

    combined = []
    for (wc, bc), (wb, bb) in zip(curve_params, block_params):
        wc = np.asarray(wc, np.float64)                      # (c_in, h)
        wb = np.asarray(wb, np.float64)                      # (b_in, h)
        ci, hc = wc.shape
        bi, hb = wb.shape
        w = np.zeros((ci + bi, hc + hb), np.float64)         # block-diagonal
        w[:ci, :hc] = wc
        w[ci:, hc:] = wb
        b = np.concatenate([np.asarray(bc, np.float64)[0], np.asarray(bb, np.float64)[0]])
        combined.append((w, b))

    # output_layer(cat(curve, block)) folds into the last linear (no activation between)
    w_last, b_last = combined[-1]                            # (2*h_last, 4), (4,)
    combined[-1] = (w_last @ w_o, b_last @ w_o + b_o[0])     # (2*h_last, 2), (2,)

    max_dim = max(max(w.shape) for w, _ in combined)
    max_dim = -(-max_dim // 8) * 8                           # sublane-align

    n = len(combined)
    w_stack = np.zeros((n, max_dim, max_dim), np.float32)
    b_stack = np.zeros((n, max_dim, 1), np.float32)
    for li, (w, b) in enumerate(combined):
        in_f, out_f = w.shape
        w_stack[li, :out_f, :in_f] = w.T                     # store transposed (out, in)
        b_stack[li, :out_f, 0] = b
    return jnp.asarray(w_stack), jnp.asarray(b_stack)


def _batch_tiling(B, cap=2048):
    """Return (bt, B_pad): lane-aligned batch tile (<= cap) and padded batch size.

    cdiv tiling + padding (never one whole-batch step) keeps VMEM bounded for ragged /
    huge B; batches big enough to split get >= 2 grid steps so both v7x TCs have work.
    """
    b_lane = pl.cdiv(B, _LANE) * _LANE
    if b_lane <= 2 * _LANE:
        return b_lane, b_lane                                # too small to split
    if b_lane <= cap:
        bt = pl.cdiv(b_lane, 2 * _LANE) * _LANE              # ~half, lane-aligned -> >=2 steps
        return bt, pl.cdiv(b_lane, bt) * bt
    return cap, pl.cdiv(b_lane, cap) * cap


# --------------------------------------------------------------------------------------
# Wrapper
# --------------------------------------------------------------------------------------
def block_curve_embedder_forward(x, params, curve_in_features):
    """Pallas equivalent of BlockCurveEmbedder.forward for 2-D input x of shape (B, F).

    Returns (B, 1, 2), matching the torch forward's unsqueeze(dim=1).
    """
    del curve_in_features  # feature split is baked into the block-diagonal weights
    B, F = x.shape
    w_stack, b_stack = _pack_params(params)
    n_layers, max_dim, _ = w_stack.shape

    bt, b_pad = _batch_tiling(B)
    # Feature-major (batch-on-lanes) layout; pad batch to a tile multiple with zeros.
    xT = jnp.pad(x.astype(jnp.float32).T, ((0, 0), (0, b_pad - B)))

    kernel = functools.partial(_block_curve_kernel, n_layers=n_layers, f_in=F)

    # Advisory cost estimate so XLA schedules neighbours around the fused call well.
    itemsize = jnp.dtype(x.dtype).itemsize
    flops = 2 * b_pad * n_layers * max_dim * max_dim
    bytes_acc = int(xT.size * 4 + (w_stack.size + b_stack.size) * 4 + b_pad * 2 * itemsize)

    out = pl.pallas_call(
        kernel,
        out_shape=jax.ShapeDtypeStruct((2, b_pad), x.dtype),
        grid=(b_pad // bt,),
        in_specs=[
            pl.BlockSpec((F, bt), lambda i: (0, i)),                   # x^T batch tile
            pl.BlockSpec(w_stack.shape, lambda i: (0, 0, 0)),          # packed weights (resident)
            pl.BlockSpec(b_stack.shape, lambda i: (0, 0, 0)),          # packed biases (resident)
        ],
        out_specs=pl.BlockSpec((2, bt), lambda i: (0, i)),
        compiler_params=pltpu.CompilerParams(dimension_semantics=("parallel",)),
        cost_estimate=pl.CostEstimate(flops=flops, transcendentals=0,
                                      bytes_accessed=bytes_acc),
    )(xT, w_stack, b_stack)

    # Drop batch padding, back to batch-major, torch's unsqueeze(dim=1).
    return out[:, :B].T[:, None, :]


# --------------------------------------------------------------------------------------
# Synthetic init + pure-JAX reference (mirrors the torch module)
# --------------------------------------------------------------------------------------
def init_block_curve_embedder_params(key, curve_in, block_in, linear_layers,
                                     dtype=jnp.float32):
    """Deterministic synthetic params mimicking torch nn.Linear init.

    Weights stored (in_features, out_features); biases (1, out_features).
    """
    def init_linear(k, fan_in, fan_out):
        kw, kb = jax.random.split(k)
        bound = 1.0 / np.sqrt(fan_in)
        w = jax.random.uniform(kw, (fan_in, fan_out), dtype, minval=-bound, maxval=bound)
        b = jax.random.uniform(kb, (1, fan_out), dtype, minval=-bound, maxval=bound)
        return w, b

    def init_embedder(k, in_features):
        layers = []
        f = in_features
        for out_f in linear_layers:
            k, sub = jax.random.split(k)
            layers.append(init_linear(sub, f, out_f))
            f = out_f
        k, sub = jax.random.split(k)
        layers.append(init_linear(sub, f, 2))                # final Linear(in, 2)
        return layers

    k1, k2, k3 = jax.random.split(key, 3)
    curve_params = init_embedder(k1, curve_in)
    block_params = init_embedder(k2, block_in)
    out_params = init_linear(k3, 4, 2)                       # output_layer: Linear(4, 2)
    return curve_params, block_params, out_params


# TODO(synk): use_batch_norm=True path (BatchNorm1d(1)) not implemented; the default
#             (use_batch_norm=False) forward is reproduced exactly.
def _reference_forward(x, params, curve_in):
    """Pure-JAX reference mirroring BlockCurveEmbedder.forward for 2-D input."""
    curve_params, block_params, out_params = params

    def embedder(h, layers):
        for li, (w, b) in enumerate(layers):
            h = h @ w + b[0]
            if li < len(layers) - 1:
                h = jnp.where(h >= 0.0, h, LEAKY_SLOPE * h)
        return h

    xc = x[:, None, :curve_in]                               # unsqueeze(dim=1)
    xb = x[:, None, curve_in:]
    c = embedder(xc, curve_params)
    bl = embedder(xb, block_params)
    comb = jnp.concatenate([c, bl], axis=-1)                 # (B, 1, 4)
    w_o, b_o = out_params
    return comb @ w_o + b_o[0]                               # (B, 1, 2)


if __name__ == "__main__":
    key = jax.random.PRNGKey(0)
    k_x, k_p = jax.random.split(key)

    curve_in_features = 6
    block_in_features = 4
    linear_layers = [32, 16]

    params = init_block_curve_embedder_params(
        k_p, curve_in_features, block_in_features, linear_layers)

    # Small-batch case (single grid step).
    B = 8
    x = jax.random.normal(k_x, (B, curve_in_features + block_in_features), jnp.float32)
    out = jax.block_until_ready(block_curve_embedder_forward(x, params, curve_in_features))
    ref = _reference_forward(x, params, curve_in_features)
    np.testing.assert_allclose(np.asarray(out), np.asarray(ref), rtol=1e-4, atol=1e-5)
    assert out.shape == (B, 1, 2), out.shape

    # Ragged batch exercising cdiv tiling + padding and the 2-step (v7x-friendly) grid.
    B2 = 300
    x2 = jax.random.normal(k_x, (B2, curve_in_features + block_in_features), jnp.float32)
    out2 = jax.block_until_ready(block_curve_embedder_forward(x2, params, curve_in_features))
    ref2 = _reference_forward(x2, params, curve_in_features)
    np.testing.assert_allclose(np.asarray(out2), np.asarray(ref2), rtol=1e-4, atol=1e-5)
    assert out2.shape == (B2, 1, 2), out2.shape

    print("KERNEL_OK")
</pallas_src>

<mosaic_0001>
module attributes {stable_mosaic.version = 11 : i64} {
  func.func @_block_curve_kernel(%arg0: i32, %arg1: memref<10x128xf32, #tpu.memory_space<vmem>>, %arg2: memref<3x64x64xf32, #tpu.memory_space<vmem>>, %arg3: memref<3x64x1xf32, #tpu.memory_space<vmem>>, %arg4: memref<2x128xf32, #tpu.memory_space<vmem>>) attributes {dimension_semantics = [#tpu.dimension_semantics<parallel>], iteration_bounds = array<i64: 1>, scalar_prefetch = 0 : i64, scratch_operands = 0 : i64, tpu.core_type = #tpu.core_type<tc>, window_params = [{transform_indices = @transform_0, window_bounds = array<i64: 10, 128>}, {pipeline_mode = #tpu.pipeline_mode<synchronous>, transform_indices = @transform_1, window_bounds = array<i64: 3, 64, 64>}, {pipeline_mode = #tpu.pipeline_mode<synchronous>, transform_indices = @transform_2, window_bounds = array<i64: 3, 64, 1>}, {transform_indices = @transform_3, window_bounds = array<i64: 2, 128>}]} {
    %c0 = arith.constant 0 : index
    %c0_0 = arith.constant 0 : index
    %0 = vector.load %arg1[%c0, %c0_0] : memref<10x128xf32, #tpu.memory_space<vmem>>, vector<10x128xf32>
    %c0_1 = arith.constant 0 : index
    %c0_2 = arith.constant 0 : index
    %c0_3 = arith.constant 0 : index
    %1 = vector.load %arg2[%c0_1, %c0_2, %c0_3] : memref<3x64x64xf32, #tpu.memory_space<vmem>>, vector<1x64x64xf32>
    %2 = vector.shape_cast %1 : vector<1x64x64xf32> to vector<64x64xf32>
    %3 = vector.extract_strided_slice %2 {offsets = [0, 0], sizes = [64, 10], strides = [1, 1]} : vector<64x64xf32> to vector<64x10xf32>
    %cst = arith.constant dense<0.000000e+00> : vector<64x128xf32>
    %4 = tpu.matmul %3, %0, %cst {dimension_numbers = #tpu.dot_dimension_numbers<[1], [0], [0], [1], [0, 0, 1, 1], [], []>} : vector<64x10xf32>, vector<10x128xf32>, vector<64x128xf32> -> vector<64x128xf32>
    %c0_4 = arith.constant 0 : index
    %c0_5 = arith.constant 0 : index
    %c0_6 = arith.constant 0 : index
    %5 = vector.load %arg3[%c0_4, %c0_5, %c0_6] : memref<3x64x1xf32, #tpu.memory_space<vmem>>, vector<1x64x1xf32>
    %6 = vector.shape_cast %5 : vector<1x64x1xf32> to vector<64x1xf32>
    %7 = vector.broadcast %6 : vector<64x1xf32> to vector<64x128xf32>
    %8 = arith.addf %4, %7 : vector<64x128xf32>
    %cst_7 = arith.constant 5.000000e-02 : f32
    %9 = vector.broadcast %cst_7 : f32 to vector<64x128xf32>
    %10 = arith.mulf %9, %8 : vector<64x128xf32>
    %11 = arith.maximumf %8, %10 : vector<64x128xf32>
    %c1 = arith.constant 1 : index
    %c0_8 = arith.constant 0 : index
    %c0_9 = arith.constant 0 : index
    %12 = vector.load %arg2[%c1, %c0_8, %c0_9] : memref<3x64x64xf32, #tpu.memory_space<vmem>>, vector<1x64x64xf32>
    %13 = vector.shape_cast %12 : vector<1x64x64xf32> to vector<64x64xf32>
    %cst_10 = arith.constant dense<0.000000e+00> : vector<64x128xf32>
    %14 = tpu.matmul %13, %11, %cst_10 {dimension_numbers = #tpu.dot_dimension_numbers<[1], [0], [0], [1], [0, 0, 1, 1], [], []>} : vector<64x64xf32>, vector<64x128xf32>, vector<64x128xf32> -> vector<64x128xf32>
    %c1_11 = arith.constant 1 : index
    %c0_12 = arith.constant 0 : index
    %c0_13 = arith.constant 0 : index
    %15 = vector.load %arg3[%c1_11, %c0_12, %c0_13] : memref<3x64x1xf32, #tpu.memory_space<vmem>>, vector<1x64x1xf32>
    %16 = vector.shape_cast %15 : vector<1x64x1xf32> to vector<64x1xf32>
    %17 = vector.broadcast %16 : vector<64x1xf32> to vector<64x128xf32>
    %18 = arith.addf %14, %17 : vector<64x128xf32>
    %cst_14 = arith.constant 5.000000e-02 : f32
    %19 = vector.broadcast %cst_14 : f32 to vector<64x128xf32>
    %20 = arith.mulf %19, %18 : vector<64x128xf32>
    %21 = arith.maximumf %18, %20 : vector<64x128xf32>
    %c2 = arith.constant 2 : index
    %c0_15 = arith.constant 0 : index
    %c0_16 = arith.constant 0 : index
    %22 = vector.load %arg2[%c2, %c0_15, %c0_16] : memref<3x64x64xf32, #tpu.memory_space<vmem>>, vector<1x64x64xf32>
    %23 = vector.shape_cast %22 : vector<1x64x64xf32> to vector<64x64xf32>
    %cst_17 = arith.constant dense<0.000000e+00> : vector<64x128xf32>
    %24 = tpu.matmul %23, %21, %cst_17 {dimension_numbers = #tpu.dot_dimension_numbers<[1], [0], [0], [1], [0, 0, 1, 1], [], []>} : vector<64x64xf32>, vector<64x128xf32>, vector<64x128xf32> -> vector<64x128xf32>
    %c2_18 = arith.constant 2 : index
    %c0_19 = arith.constant 0 : index
    %c0_20 = arith.constant 0 : index
    %25 = vector.load %arg3[%c2_18, %c0_19, %c0_20] : memref<3x64x1xf32, #tpu.memory_space<vmem>>, vector<1x64x1xf32>
    %26 = vector.shape_cast %25 : vector<1x64x1xf32> to vector<64x1xf32>
    %27 = vector.broadcast %26 : vector<64x1xf32> to vector<64x128xf32>
    %28 = arith.addf %24, %27 : vector<64x128xf32>
    %29 = vector.extract_strided_slice %28 {offsets = [0, 0], sizes = [2, 128], strides = [1, 1]} : vector<64x128xf32> to vector<2x128xf32>
    %c0_21 = arith.constant 0 : index
    %c0_22 = arith.constant 0 : index
    %30 = vector.load %arg4[%c0_21, %c0_22] : memref<2x128xf32, #tpu.memory_space<vmem>>, vector<2x128xf32>
    tpu.vector_store %arg4[%c0_21, %c0_22], %29 {strides = array<i32>} : memref<2x128xf32, #tpu.memory_space<vmem>>, vector<2x128xf32>,
    return
  }
  func.func @transform_0(%arg0: i32) -> (i32, i32) {
    %c0_i32 = arith.constant 0 : i32
    %c0_i32_0 = arith.constant 0 : i32
    return %c0_i32, %arg0 : i32, i32
  }
  func.func @transform_1(%arg0: i32) -> (i32, i32, i32) {
    %c0_i32 = arith.constant 0 : i32
    %c0_i32_0 = arith.constant 0 : i32
    %c0_i32_1 = arith.constant 0 : i32
    %c0_i32_2 = arith.constant 0 : i32
    return %c0_i32, %c0_i32_0, %c0_i32_1 : i32, i32, i32
  }
  func.func @transform_2(%arg0: i32) -> (i32, i32, i32) {
    %c0_i32 = arith.constant 0 : i32
    %c0_i32_0 = arith.constant 0 : i32
    %c0_i32_1 = arith.constant 0 : i32
    %c0_i32_2 = arith.constant 0 : i32
    return %c0_i32, %c0_i32_0, %c0_i32_1 : i32, i32, i32
  }
  func.func @transform_3(%arg0: i32) -> (i32, i32) {
    %c0_i32 = arith.constant 0 : i32
    %c0_i32_0 = arith.constant 0 : i32
    return %c0_i32, %arg0 : i32, i32
  }
}

</mosaic_0001>

<bundles_post_ra>
// kernel: tpu_custom_call.1
= control target key start
LH: loop header
LB: loop body
LE: loop exit
PB: predicated region body
PF: predicated region fallthrough
CT: control target
= control target key end

     0   :  { %8 = vsyncpa [#allocation3], 0  ;;  %s1092_s0 = inlined_call_operand.hbm [shape: f32[10,128], index: 0, kind: input, shape index: {}]   ;;  %s1093_s1 = inlined_call_operand.vmem [shape: f32[3,64,64], index: 1, kind: input, shape index: {}]   ;;  %s1094_s2 = inlined_call_operand.vmem [shape: f32[3,64,1], index: 2, kind: input, shape index: {}]   ;;  %s1095_s3 = inlined_call_operand.hbm [shape: f32[2,128], index: 3, kind: output, shape index: {}]  }
   0x1   :  { %9 = vsyncpa [#allocation4], 0  ;;  %s895_s12 = smov [#allocation2]   ;;  %s847_s16 = scalar_lea.hbm %s1092_s0, 256 }
   0x2   :  { %s15_s13 = sshll.u32 %s895_s12, 4  ;;  %p848_p0 = scmp.ne.s32.totalorder %s1092_s0, %s847_s16  ;;  %s16_s13 = int_to_ptr.vmem [resolvable:$true] %s15_s13 }
   0x3   :  { %p851_p1 = scmp.lt.u32.totalorder %s847_s16, %s1092_s0 }
   0x5   :  { %p853_p2 = pnand %p851_p1, %p848_p0 }
   0x7   :  { %856 = shalt.err (!%p853_p2)
}
   0x8   :  { %s857_s21 = scalar_lea.vmem %s16_s13, 256  ;;  %p862_p4 = scmp.lt.s32.totalorder %s16_s13, %s16_s13 }
   0x9   :  { %p858_p3 = scmp.ne.s32.totalorder %s16_s13, %s857_s21  ;;  %p863_p5 = scmp.lt.s32.totalorder %s857_s21, %s857_s21 }
   0xb   :  { %p864_p6 = por %p863_p5, %p862_p4 }
   0xd   :  { %p865_p7 = pnand %p864_p6, %p858_p3 }
   0xf   :  { %868 = shalt.err (!%p865_p7)
}
  0x10   :  { %s896_s22 = smov 128   ;;  %s897_s23 = smov 8  }
  0x11   :  { %21 = dma.hbm_to_vmem [thread:$0]  %s1092_s0, 256, %s16_s13, [#allocation3], %s896_s22, %s896_s22, %s897_s23  }
  0x12   :  { %891 = dma.done.wait [#allocation3], 256  }
  0x13   :  { %892 = vsyncadd [#allocation3], 4294967040  ;;  %v898_v0 = vmov 0   ;;  %vm112_vm0 = vcmask 1041408   ;;  %vm87_vm1 = vcmask 80896   ;;  %vm899_vm2 = vmmov 1  }
  0x14   :  { %845 = vset.pattern.permute.xlu0 %v898_v0  ;;  %846 = vset.pattern.permute.xlu1 %v898_v0  ;;  %vm802_vm3 = vmpackc.low %vm112_vm0, %vm899_vm2  ;;  %v29_v1 = vld [vmem:[#allocation2] sm:$0xff]  ;;  %v30_v2 = vld [vmem:[#allocation2 + $0x8] sm:$0x3]  ;;  %vm295_vm4 = vcmask 523264   ;;  %s900_s22 = smov [#allocation5]  }
  0x15   :  { %v31_v3 = vld [vmem:[%s1093_s1] sm:$0xff]  ;;  %v801_v4 = vpack.c.bf16 %v30_v2, %v29_v1  ;;  %v32_v6 = vld [vmem:[%s1093_s1 + $0x8] sm:$0xff]  ;;  %v41_v7 = vld [vmem:[%s1094_s2 + $0x10] sm:$0xff]  ;;  %s621_s23 = sshll.u32 %s900_s22, 4  ;;  %s622_s23 = int_to_ptr.vmem [resolvable:$true] %s621_s23 }
  0x16   :  { %733 = vmatprep.mubr.msk.f32.mxu0 %vm87_vm1, %v31_v3  ;;  %v39_v5 = vld [vmem:[%s1094_s2] sm:$0xff]  ;;  %v33_v8 = vld [vmem:[%s1093_s1 + $0x10] sm:$0xff]  ;;  %v40_v9 = vld [vmem:[%s1094_s2 + $0x8] sm:$0xff]  ;;  %59 = vperm.xlu1 %846, %v41_v7   ;;  %s869_s24 = scalar_lea.vmem %s622_s23, 32  ;;  %p874_p9 = scmp.lt.s32.totalorder %s622_s23, %s622_s23 }
  0x17   :  { %803 = vmatprep.subr.msk.bf16.mxu0 %vm802_vm3, %v801_v4  ;;  %49 = vperm.xlu0 %845, %v39_v5   ;;  %v42_v10 = vld [vmem:[%s1094_s2 + $0x18] sm:$0xff]  ;;  %v35_v12 = vld [vmem:[%s1093_s1 + $0x20] sm:$0xff]  ;;  %v44_v14 = vld [vmem:[%s1094_s2 + $0x28] sm:$0xff]  ;;  %p870_p8 = scmp.ne.s32.totalorder %s622_s23, %s869_s24  ;;  %p875_p10 = scmp.lt.s32.totalorder %s869_s24, %s869_s24 }
  0x18   :  { %806 = vmatpush3.bf16.msk.msra.mxu0 %vm802_vm3, %v801_v4  ;;  %v34_v11 = vld [vmem:[%s1093_s1 + $0x18] sm:$0xff]  ;;  %v43_v13 = vld [vmem:[%s1094_s2 + $0x20] sm:$0xff]  ;;  %v36_v15 = vld [vmem:[%s1093_s1 + $0x28] sm:$0xff] }
  0x19   :  { %v37_v16 = vld [vmem:[%s1093_s1 + $0x30] sm:$0xff]  ;;  %v46_v18 = vld [vmem:[%s1094_s2 + $0x38] sm:$0xff]  ;;  %v647_v20 = vld [vmem:[%s1094_s2 + $0x40] sm:$0xff]  ;;  %p876_p11 = por %p875_p10, %p874_p9 }
  0x1a   :  { %64 = vperm.xlu1 %846, %v42_v10   ;;  %v45_v17 = vld [vmem:[%s1094_s2 + $0x30] sm:$0xff]  ;;  %v38_v19 = vld [vmem:[%s1093_s1 + $0x38] sm:$0xff]  ;;  %v648_v21 = vld [vmem:[%s1094_s2 + $0x48] sm:$0xff] }
  0x1b   :  { %734 = vmatmul.mubr.msk.f32.vlgmr.msra.gmra.mrb[0].mxu0 %vm87_vm1, %v32_v6  ;;  %54 = vperm.xlu0 %845, %v40_v9   ;;  %v649_v22 = vld [vmem:[%s1094_s2 + $0x50] sm:$0xff]  ;;  %v650_v23 = vld [vmem:[%s1094_s2 + $0x58] sm:$0xff]  ;;  %v651_v24 = vld [vmem:[%s1094_s2 + $0x60] sm:$0xff]  ;;  %p877_p12 = pnand %p876_p11, %p870_p8 }
  0x1c   :  { %736 = vmatprep.mubr.msk.f32.mxu0 %vm87_vm1, %v33_v8  ;;  %v652_v25 = vld [vmem:[%s1094_s2 + $0x68] sm:$0xff]  ;;  %v653_v26 = vld [vmem:[%s1094_s2 + $0x70] sm:$0xff]  ;;  %v654_v27 = vld [vmem:[%s1094_s2 + $0x78] sm:$0xff] }
  0x1d   :  { %v671_v28 = vld [vmem:[%s1094_s2 + $0x80] sm:$0xff]  ;;  %v640_v10 = vld [vmem:[%s1093_s1 + $0x48] sm:$0xff] }
  0x1e   :  { %74 = vperm.xlu1 %846, %v44_v14   ;;  %v639_v29 = vld [vmem:[%s1093_s1 + $0x40] sm:$0xff]  ;;  %v644_v14 = vld [vmem:[%s1093_s1 + $0x68] sm:$0xff] }
  0x1f   :  { %737 = vmatmul.mubr.msk.f32.gmra.mrb[2].mxu0 %vm87_vm1, %v34_v11  ;;  %69 = vperm.xlu0 %845, %v43_v13   ;;  %v641_v11 = vld [vmem:[%s1093_s1 + $0x50] sm:$0xff]  ;;  %v643_v13 = vld [vmem:[%s1093_s1 + $0x60] sm:$0xff] }
  0x20   :  { %739 = vmatprep.mubr.msk.f32.mxu0 %vm87_vm1, %v35_v12  ;;  %761 = vmatprep.mubr.msk.f32.mxu1 %vm295_vm4, %v639_v29  ;;  %v642_v12 = vld [vmem:[%s1093_s1 + $0x58] sm:$0xff] }
  0x22   :  { %84 = vperm.xlu1 %846, %v46_v18  }
  0x23   :  { %740 = vmatmul.mubr.msk.f32.gmra.mrb[4].mxu0 %vm87_vm1, %v36_v15  ;;  %79 = vperm.xlu0 %845, %v45_v17   ;;  %v645_v15 = vld [vmem:[%s1093_s1 + $0x70] sm:$0xff]  ;;  %v663_v17 = vld [vmem:[%s1093_s1 + $0x80] sm:$0xff] }
  0x24   :  { %742 = vmatprep.mubr.msk.f32.mxu0 %vm87_vm1, %v37_v16  ;;  %v646_v16 = vld [vmem:[%s1093_s1 + $0x78] sm:$0xff] }
  0x26   :  { %262 = vperm.xlu1 %846, %v648_v21  }
  0x27   :  { %743 = vmatmul.mubr.msk.f32.gmra.mrb[6].mxu0 %vm87_vm1, %v38_v19  ;;  %257 = vperm.xlu0 %845, %v647_v20  }
  0x28   :  { %789 = vmatprep.mubr.msk.f32.mxu0 %vm295_vm4, %v663_v17 }
  0x2a   :  { %272 = vperm.xlu1 %846, %v650_v23  }
  0x2b   :  { %267 = vperm.xlu0 %845, %v649_v22  }
  0x2e   :  { %282 = vperm.xlu1 %846, %v652_v25  }
  0x2f   :  { %277 = vperm.xlu0 %845, %v651_v24  }
  0x32   :  { %292 = vperm.xlu1 %846, %v654_v27  }
  0x33   :  { %287 = vperm.xlu0 %845, %v653_v26  }
  0x37   :  { %461 = vperm.xlu0 %845, %v671_v28  }
  0x95   :  { %v60_v31 = vpop.permute.xlu1 %59 }
  0x96   :  { %v50_v30 = vpop.permute.xlu0 %49 }
  0x99   :  { %v65_v33 = vpop.permute.xlu1 %64 }
  0x9a   :  { %v55_v32 = vpop.permute.xlu0 %54 }
  0x9d   :  { %v75_v44 = vpop.permute.xlu1 %74 }
  0x9e   :  { %v70_v47 = vpop.permute.xlu0 %69 }
  0xa1   :  { %v85_v58 = vpop.permute.xlu1 %84 }
  0xa2   :  { %v80_v62 = vpop.permute.xlu0 %79 }
  0xa5   :  { %v263_v18 = vpop.permute.xlu1 %262 }
  0xa6   :  { %v258_v19 = vpop.permute.xlu0 %257 }
  0xa9   :  { %v273_v20 = vpop.permute.xlu1 %272 }
  0xaa   :  { %v268_v22 = vpop.permute.xlu0 %267 }
  0xee   :  { %v735_v34 = vpop.f32.mrb[0].mxu0 }
  0xef   :  { %v188_v35 = vadd.f32 %v735_v34, %v55_v32  ;;  %v182_v36 = vpop.f32.mrb[1].mxu0  ;;  %v283_v32 = vpop.permute.xlu1 %282 }
  0xf0   :  { %v183_v37 = vadd.f32 %v182_v36, %v50_v30 }
  0xf1   :  { %v222_v38 = vmul.f32 0.05, %v188_v35 }
  0xf2   :  { %v221_v39 = vmul.f32 0.05, %v183_v37  ;;  %v738_v40 = vpop.f32.mrb[2].mxu0 }
  0xf3   :  { %v230_v41 = vmax.f32 %v188_v35, %v222_v38  ;;  %v198_v42 = vadd.f32 %v738_v40, %v65_v33  ;;  %v192_v43 = vpop.f32.mrb[3].mxu0  ;;  %v278_v35 = vpop.permute.xlu0 %277 }
  0xf4   :  { %v229_v45 = vmax.f32 %v183_v37, %v221_v39  ;;  %v193_v46 = vadd.f32 %v192_v43, %v60_v31 }
  0xf5   :  { %v224_v48 = vmul.f32 0.05, %v198_v42 }
  0xf6   :  { %v223_v49 = vmul.f32 0.05, %v193_v46  ;;  %v741_v50 = vpop.f32.mrb[4].mxu0  ;;  %v807_v51 = vpack.c.bf16 %v230_v41, %v229_v45 }
  0xf7   :  { %v232_v52 = vmax.f32 %v198_v42, %v224_v48  ;;  %v208_v53 = vadd.f32 %v741_v50, %v75_v44  ;;  %v202_v54 = vpop.f32.mrb[5].mxu0  ;;  %v288_v50 = vpop.permute.xlu0 %287 }
  0xf8   :  { %v231_v55 = vmax.f32 %v193_v46, %v223_v49  ;;  %v203_v56 = vadd.f32 %v202_v54, %v70_v47  ;;  %808 = vmatprep.subr.bf16.mxu1 %v807_v51  ;;  %v293_v46 = vpop.permute.xlu1 %292 }
  0xf9   :  { %v226_v57 = vmul.f32 0.05, %v208_v53  ;;  %810 = vmatpush3.bf16.msra.mxu1 %v807_v51 }
  0xfa   :  { %v225_v59 = vmul.f32 0.05, %v203_v56  ;;  %v744_v60 = vpop.f32.mrb[6].mxu0  ;;  %v811_v61 = vpack.c.bf16 %v232_v52, %v231_v55 }
  0xfb   :  { %v234_v63 = vmax.f32 %v208_v53, %v226_v57  ;;  %v218_v0 = vadd.f32 %v744_v60, %v85_v58  ;;  %v212_v1 = vpop.f32.mrb[7].mxu0 }
  0xfc   :  { %v233_v2 = vmax.f32 %v203_v56, %v225_v59  ;;  %v213_v3 = vadd.f32 %v212_v1, %v80_v62  ;;  %812 = vmatprep.subr.bf16.mxu1 %v811_v61  ;;  %v664_v62 = vld [vmem:[%s1093_s1 + $0x88] sm:$0xff]  ;;  %v667_v1 = vld [vmem:[%s1093_s1 + $0xa0] sm:$0xff] }
  0xfd   :  { %v228_v4 = vmul.f32 0.05, %v218_v0  ;;  %814 = vmatpush3.bf16.msra.mxu1 %v811_v61 }
  0xfe   :  { %v227_v5 = vmul.f32 0.05, %v213_v3  ;;  %v815_v6 = vpack.c.bf16 %v234_v63, %v233_v2  ;;  %v665_v63 = vld [vmem:[%s1093_s1 + $0x90] sm:$0xff]  ;;  %v668_v2 = vld [vmem:[%s1093_s1 + $0xa8] sm:$0xff] }
  0xff   :  { %v236_v7 = vmax.f32 %v218_v0, %v228_v4  ;;  %v666_v0 = vld [vmem:[%s1093_s1 + $0x98] sm:$0xff] }
 0x100   :  { %v235_v8 = vmax.f32 %v213_v3, %v227_v5  ;;  %816 = vmatprep.subr.bf16.mxu1 %v815_v6  ;;  %v669_v3 = vld [vmem:[%s1093_s1 + $0xb0] sm:$0xff]  ;;  %v670_v4 = vld [vmem:[%s1093_s1 + $0xb8] sm:$0xff] }
 0x101   :  { %818 = vmatpush3.bf16.msra.mxu1 %v815_v6  ;;  %v462_v6 = vpop.permute.xlu0 %461 }
 0x102   :  { %v819_v9 = vpack.c.bf16 %v236_v7, %v235_v8 }
 0x104   :  { %820 = vmatprep.subr.bf16.mxu1 %v819_v9 }
 0x105   :  { %822 = vmatpush3.bf16.msra.mxu1 %v819_v9 }
 0x108   :  { %762 = vmatmul.mubr.msk.f32.vlgmr.msra.gmra.mrb[0].mxu1 %vm295_vm4, %v640_v10 }
 0x109   :  { %764 = vmatprep.mubr.msk.f32.mxu1 %vm295_vm4, %v641_v11 }
 0x10c   :  { %765 = vmatmul.mubr.msk.f32.gmra.mrb[2].mxu1 %vm295_vm4, %v642_v12 }
 0x10d   :  { %767 = vmatprep.mubr.msk.f32.mxu1 %vm295_vm4, %v643_v13 }
 0x110   :  { %768 = vmatmul.mubr.msk.f32.gmra.mrb[4].mxu1 %vm295_vm4, %v644_v14 }
 0x111   :  { %770 = vmatprep.mubr.msk.f32.mxu1 %vm295_vm4, %v645_v15 }
 0x114   :  { %771 = vmatmul.mubr.msk.f32.gmra.mrb[6].mxu1 %vm295_vm4, %v646_v16 }
 0x1db   :  { %v763_v21 = vpop.f32.mrb[0].mxu1 }
 0x1dc   :  { %v392_v23 = vadd.f32 %v763_v21, %v263_v18  ;;  %v386_v24 = vpop.f32.mrb[1].mxu1 }
 0x1dd   :  { %v387_v25 = vadd.f32 %v386_v24, %v258_v19 }
 0x1de   :  { %v426_v26 = vmul.f32 0.05, %v392_v23 }
 0x1df   :  { %v425_v27 = vmul.f32 0.05, %v387_v25  ;;  %v766_v28 = vpop.f32.mrb[2].mxu1 }
 0x1e0   :  { %v434_v29 = vmax.f32 %v392_v23, %v426_v26  ;;  %v402_v30 = vadd.f32 %v766_v28, %v273_v20  ;;  %v396_v31 = vpop.f32.mrb[3].mxu1 }
 0x1e1   :  { %v433_v33 = vmax.f32 %v387_v25, %v425_v27  ;;  %v397_v34 = vadd.f32 %v396_v31, %v268_v22 }
 0x1e2   :  { %v428_v36 = vmul.f32 0.05, %v402_v30 }
 0x1e3   :  { %v427_v37 = vmul.f32 0.05, %v397_v34  ;;  %v769_v38 = vpop.f32.mrb[4].mxu1  ;;  %v823_v39 = vpack.c.bf16 %v434_v29, %v433_v33 }
 0x1e4   :  { %v436_v40 = vmax.f32 %v402_v30, %v428_v36  ;;  %v412_v41 = vadd.f32 %v769_v38, %v283_v32  ;;  %v406_v42 = vpop.f32.mrb[5].mxu1 }
 0x1e5   :  { %v435_v43 = vmax.f32 %v397_v34, %v427_v37  ;;  %v407_v44 = vadd.f32 %v406_v42, %v278_v35  ;;  %824 = vmatprep.subr.bf16.mxu0 %v823_v39 }
 0x1e6   :  { %v430_v45 = vmul.f32 0.05, %v412_v41  ;;  %826 = vmatpush3.bf16.msra.mxu0 %v823_v39 }
 0x1e7   :  { %v429_v47 = vmul.f32 0.05, %v407_v44  ;;  %v772_v48 = vpop.f32.mrb[6].mxu1  ;;  %v827_v49 = vpack.c.bf16 %v436_v40, %v435_v43 }
 0x1e8   :  { %v438_v51 = vmax.f32 %v412_v41, %v430_v45  ;;  %v422_v52 = vadd.f32 %v772_v48, %v293_v46  ;;  %v416_v53 = vpop.f32.mrb[7].mxu1 }
 0x1e9   :  { %v437_v54 = vmax.f32 %v407_v44, %v429_v47  ;;  %v417_v55 = vadd.f32 %v416_v53, %v288_v50  ;;  %828 = vmatprep.subr.bf16.mxu0 %v827_v49 }
 0x1ea   :  { %v432_v56 = vmul.f32 0.05, %v422_v52  ;;  %830 = vmatpush3.bf16.msra.mxu0 %v827_v49 }
 0x1eb   :  { %v431_v57 = vmul.f32 0.05, %v417_v55  ;;  %v831_v58 = vpack.c.bf16 %v438_v51, %v437_v54 }
 0x1ec   :  { %v440_v59 = vmax.f32 %v422_v52, %v432_v56 }
 0x1ed   :  { %v439_v60 = vmax.f32 %v417_v55, %v431_v57  ;;  %832 = vmatprep.subr.bf16.mxu0 %v831_v58 }
 0x1ee   :  { %834 = vmatpush3.bf16.msra.mxu0 %v831_v58 }
 0x1ef   :  { %v835_v61 = vpack.c.bf16 %v440_v59, %v439_v60 }
 0x1f1   :  { %836 = vmatprep.subr.bf16.mxu0 %v835_v61 }
 0x1f2   :  { %838 = vmatpush3.bf16.msra.mxu0 %v835_v61 }
 0x1f5   :  { %790 = vmatmul.mubr.msk.f32.vlgmr.msra.gmra.mrb[8].mxu0 %vm295_vm4, %v664_v62 }
 0x1f6   :  { %792 = vmatprep.mubr.msk.f32.mxu0 %vm295_vm4, %v665_v63 }
 0x1f9   :  { %793 = vmatmul.mubr.msk.f32.gmra.mrb[10].mxu0 %vm295_vm4, %v666_v0 }
 0x1fa   :  { %795 = vmatprep.mubr.msk.f32.mxu0 %vm295_vm4, %v667_v1 }
 0x1fd   :  { %796 = vmatmul.mubr.msk.f32.gmra.mrb[12].mxu0 %vm295_vm4, %v668_v2 }
 0x1fe   :  { %798 = vmatprep.mubr.msk.f32.mxu0 %vm295_vm4, %v669_v3 }
 0x201   :  { %799 = vmatmul.mubr.msk.f32.gmra.mrb[14].mxu0 %vm295_vm4, %v670_v4 }
 0x2c8   :  { %v791_v5 = vpop.f32.mrb[8].mxu0 }
 0x2c9   :  { %v582_v7 = vpop.f32.mrb[9].mxu0 }
 0x2ca   :  { %v583_v8 = vadd.f32 %v582_v7, %v462_v6 }
 0x2cc   :  { %614 = vst [vmem:[#allocation5] sm:$0x3] %v583_v8  ;;  %v794_v9 = vpop.f32.mrb[10].mxu0 }
 0x2cd   :  { %v591_v10 = vpop.f32.mrb[11].mxu0 }
 0x2ce   :  { %880 = shalt.err (!%p877_p12)
}
 0x2cf   :  { %s881_s26 = scalar_lea.hbm %s1095_s3, 32 }
 0x2d0   :  { %p882_p13 = scmp.ne.s32.totalorder %s1095_s3, %s881_s26  ;;  %p885_p0 = scmp.lt.u32.totalorder %s881_s26, %s1095_s3 }
 0x2d2   :  { %p887_p1 = pnand %p885_p0, %p882_p13 }
 0x2d4   :  { %890 = shalt.err (!%p887_p1)
}
 0x2d5   :  { %624 = dma.vmem_to_hbm [thread:$0]  %s622_s23, 32, %s1095_s3, [#allocation4]   ;;  %v797_v11 = vpop.f32.mrb[12].mxu0 }
 0x2d6   :  { %v599_v12 = vpop.f32.mrb[13].mxu0 }
 0x2d7   :  { %v800_v13 = vpop.f32.mrb[14].mxu0 }
 0x2d8   :  { %v607_v14 = vpop.f32.mrb[15].mxu0 }
 0x2d9   :  { %893 = dma.done.wait [#allocation4], 32  }
 0x2da   :  { %894 = vsyncadd [#allocation4], 4294967264 }
 0x2db   :  { %628 = vsyncpa [#allocation3], 1 }
 0x2dc   :  { %629 = vsyncpa [#allocation4], 1 }

</bundles_post_ra>
